<compile_context>
chip_gen: v7x
topology: tpu7x:2x2x1
jax: 0.10.0
libtpu: 0.0.40
codegen_flags: <defaults>
</compile_context>

<pallas_src>
import math

import jax
import jax.numpy as jnp
from jax.experimental import pallas as pl
from jax.experimental.pallas import tpu as pltpu

THRESHOLD = 1.4

# ~2 MiB per operand per block: 3 operands x 2 buffers x 2 MiB = 12 MiB,
# within v5e's 16 MiB default scoped VMEM and well within v6e/v7x's 32 MiB.
TARGET_BLOCK_BYTES = 2 * 1024 * 1024
MIN_GRID = 4  # keep >= 4 blocks when possible (v7x dual-TC + pipelining)

_COL_CANDIDATES = (2048, 1024, 512, 256, 128)  # lane-dense (multiples of 128)


def _round_up(x: int, m: int) -> int:
    return ((x + m - 1) // m) * m


def _choose_cols(shape) -> int:
    """Pick a lane-dense column count that exactly divides the element count
    (so the 2-D reshape is a free bitcast and no padding is ever needed)."""
    total = math.prod(shape)
    for c in _COL_CANDIDATES:
        if total % c == 0:
            return c
    # Awkward sizes: keep the original last dim (reshape stays free; stores
    # may be masked, but this is a rare fallback and still copy-free).
    return int(shape[-1])


def threshold_backward_kernel(grad_ref, input_ref, out_ref):
    out_ref[...] = jnp.where(input_ref[...] > THRESHOLD, grad_ref[...], 0.0)


def threshold_backward(grad: jax.Array, inp: jax.Array) -> jax.Array:
    assert grad.shape == inp.shape
    assert grad.dtype == jnp.float32 and inp.dtype == jnp.float32
    orig_shape = grad.shape
    total = grad.size

    cols = _choose_cols(orig_shape)
    rows = total // cols  # exact by construction

    # Free (bitcast) reshapes: row-major collapse to (rows, cols).
    g2 = grad.reshape(rows, cols)
    x2 = inp.reshape(rows, cols)

    # Row-block sizing: multiple of 8 (sublane tile), capped by the per-operand
    # VMEM target, and small enough to give >= MIN_GRID blocks when possible.
    target_rows = max(8, (TARGET_BLOCK_BYTES // (cols * 4)) // 8 * 8)
    if rows <= 8:
        block_rows = rows  # single block, full row extent
    else:
        block_rows = min(target_rows, _round_up(pl.cdiv(rows, MIN_GRID), 8))
        block_rows = max(8, block_rows)

    grid = (pl.cdiv(rows, block_rows),)  # ragged tail handled by OOB masking

    spec = pl.BlockSpec((block_rows, cols), lambda i: (i, 0))

    out2 = pl.pallas_call(
        threshold_backward_kernel,
        out_shape=jax.ShapeDtypeStruct((rows, cols), jnp.float32),
        grid=grid,
        in_specs=[spec, spec],
        out_specs=spec,
        compiler_params=pltpu.CompilerParams(
            dimension_semantics=("parallel",),
        ),
        cost_estimate=pl.CostEstimate(
            flops=total, transcendentals=0, bytes_accessed=3 * total * 4
        ),
    )(g2, x2)

    return out2.reshape(orig_shape)


def _ref(grad, inp):
    return jnp.where(inp > THRESHOLD, grad, jnp.zeros_like(grad))


if __name__ == "__main__":
    key = jax.random.PRNGKey(0)
    k1, k2, k3, k4, k5, k6 = jax.random.split(key, 6)

    # Small 3-D float32 case (matches the module's [-1,-1,-1] f32 args).
    shape_small = (2, 8, 32)
    grad_s = jax.random.normal(k1, shape_small, dtype=jnp.float32)
    inp_s = jax.random.normal(k2, shape_small, dtype=jnp.float32) * 2.0
    out_s = jax.block_until_ready(threshold_backward(grad_s, inp_s))
    assert out_s.shape == shape_small and out_s.dtype == jnp.float32
    assert jnp.array_equal(out_s, _ref(grad_s, inp_s)), "small-shape mismatch"

    # Multi-block lane-dense path (cols=2048, 4 blocks with a ragged tail).
    shape_med = (4, 48, 640)
    grad_m = jax.random.normal(k3, shape_med, dtype=jnp.float32)
    inp_m = jax.random.normal(k4, shape_med, dtype=jnp.float32) * 2.0
    out_m = jax.block_until_ready(threshold_backward(grad_m, inp_m))
    assert out_m.shape == shape_med and out_m.dtype == jnp.float32
    assert jnp.array_equal(out_m, _ref(grad_m, inp_m)), "medium-shape mismatch"

    # Awkward size exercising the no-128-divisor fallback (cols = last dim).
    shape_odd = (3, 5, 7)
    grad_o = jax.random.normal(k5, shape_odd, dtype=jnp.float32)
    inp_o = jax.random.normal(k6, shape_odd, dtype=jnp.float32) * 2.0
    out_o = jax.block_until_ready(threshold_backward(grad_o, inp_o))
    assert out_o.shape == shape_odd and out_o.dtype == jnp.float32
    assert jnp.array_equal(out_o, _ref(grad_o, inp_o)), "odd-shape mismatch"

    print("KERNEL_OK")
</pallas_src>

<mosaic_0001>
module attributes {stable_mosaic.version = 11 : i64} {
  func.func @threshold_backward_kernel(%arg0: i32, %arg1: memref<1x512xf32, #tpu.memory_space<vmem>>, %arg2: memref<1x512xf32, #tpu.memory_space<vmem>>, %arg3: memref<1x512xf32, #tpu.memory_space<vmem>>) attributes {dimension_semantics = [#tpu.dimension_semantics<parallel>], iteration_bounds = array<i64: 1>, scalar_prefetch = 0 : i64, scratch_operands = 0 : i64, tpu.core_type = #tpu.core_type<tc>, window_params = [{transform_indices = @transform_0, window_bounds = array<i64: 1, 512>}, {transform_indices = @transform_1, window_bounds = array<i64: 1, 512>}, {transform_indices = @transform_2, window_bounds = array<i64: 1, 512>}]} {
    %c0 = arith.constant 0 : index
    %c0_0 = arith.constant 0 : index
    %0 = vector.load %arg2[%c0, %c0_0] : memref<1x512xf32, #tpu.memory_space<vmem>>, vector<1x512xf32>
    %cst = arith.constant 1.400000e+00 : f32
    %1 = vector.broadcast %cst : f32 to vector<1x512xf32>
    %2 = arith.cmpf ogt, %0, %1 : vector<1x512xf32>
    %c0_1 = arith.constant 0 : index
    %c0_2 = arith.constant 0 : index
    %3 = vector.load %arg1[%c0_1, %c0_2] : memref<1x512xf32, #tpu.memory_space<vmem>>, vector<1x512xf32>
    %cst_3 = arith.constant 0.000000e+00 : f32
    %4 = vector.broadcast %cst_3 : f32 to vector<1x512xf32>
    %5 = arith.select %2, %3, %4 : vector<1x512xi1>, vector<1x512xf32>
    %c0_4 = arith.constant 0 : index
    %c0_5 = arith.constant 0 : index
    %6 = vector.load %arg3[%c0_4, %c0_5] : memref<1x512xf32, #tpu.memory_space<vmem>>, vector<1x512xf32>
    tpu.vector_store %arg3[%c0_4, %c0_5], %5 {strides = array<i32>} : memref<1x512xf32, #tpu.memory_space<vmem>>, vector<1x512xf32>,
    return
  }
  func.func @transform_0(%arg0: i32) -> (i32, i32) {
    %c0_i32 = arith.constant 0 : i32
    %c0_i32_0 = arith.constant 0 : i32
    return %arg0, %c0_i32 : i32, i32
  }
  func.func @transform_1(%arg0: i32) -> (i32, i32) {
    %c0_i32 = arith.constant 0 : i32
    %c0_i32_0 = arith.constant 0 : i32
    return %arg0, %c0_i32 : i32, i32
  }
  func.func @transform_2(%arg0: i32) -> (i32, i32) {
    %c0_i32 = arith.constant 0 : i32
    %c0_i32_0 = arith.constant 0 : i32
    return %arg0, %c0_i32 : i32, i32
  }
}

</mosaic_0001>

<bundles_post_ra>
// kernel: tpu_custom_call.1
= control target key start
LH: loop header
LB: loop body
LE: loop exit
PB: predicated region body
PF: predicated region fallthrough
CT: control target
= control target key end

     0   :  { %7 = vsyncpa [#allocation3], 0  ;;  %s190_s0 = inlined_call_operand.hbm [shape: f32[1,512], index: 0, kind: input, shape index: {}]   ;;  %s191_s1 = inlined_call_operand.hbm [shape: f32[1,512], index: 1, kind: input, shape index: {}]   ;;  %s192_s2 = inlined_call_operand.hbm [shape: f32[1,512], index: 2, kind: output, shape index: {}]  }
   0x1   :  { %8 = vsyncpa [#allocation6], 0 }
   0x2   :  { %9 = vsyncpa [#allocation4], 0  ;;  %s136_s9 = smov [#allocation2]   ;;  %s137_s11 = smov [#allocation5]  }
   0x3   :  { %s16_s10 = sshll.u32 %s136_s9, 4  ;;  %s26_s12 = sshll.u32 %s137_s11, 4  ;;  %s17_s10 = int_to_ptr.vmem [resolvable:$true] %s16_s10  ;;  %s27_s12 = int_to_ptr.vmem [resolvable:$true] %s26_s12 }
   0x4   :  { %s64_s15 = scalar_lea.hbm %s190_s0, 64 }
   0x5   :  { %p65_p0 = scmp.ne.s32.totalorder %s190_s0, %s64_s15  ;;  %p68_p1 = scmp.lt.u32.totalorder %s64_s15, %s190_s0 }
   0x7   :  { %p70_p2 = pnand %p68_p1, %p65_p0 }
   0x9   :  { %73 = shalt.err (!%p70_p2)
}
   0xa   :  { %s74_s20 = scalar_lea.vmem %s17_s10, 64  ;;  %p79_p4 = scmp.lt.s32.totalorder %s17_s10, %s17_s10 }
   0xb   :  { %p75_p3 = scmp.ne.s32.totalorder %s17_s10, %s74_s20  ;;  %p80_p5 = scmp.lt.s32.totalorder %s74_s20, %s74_s20 }
   0xd   :  { %p81_p6 = por %p80_p5, %p79_p4 }
   0xf   :  { %p82_p7 = pnand %p81_p6, %p75_p3 }
  0x11   :  { %85 = shalt.err (!%p82_p7)
}
  0x12   :  { %19 = dma.hbm_to_vmem [thread:$0]  %s190_s0, 64, %s17_s10, [#allocation3]  }
  0x13   :  { %s86_s25 = scalar_lea.hbm %s191_s1, 64 }
  0x14   :  { %p87_p8 = scmp.ne.s32.totalorder %s191_s1, %s86_s25  ;;  %p90_p9 = scmp.lt.u32.totalorder %s86_s25, %s191_s1 }
  0x16   :  { %p92_p10 = pnand %p90_p9, %p87_p8 }
  0x18   :  { %95 = shalt.err (!%p92_p10)
}
  0x19   :  { %s96_s30 = scalar_lea.vmem %s27_s12, 64  ;;  %p101_p12 = scmp.lt.s32.totalorder %s27_s12, %s27_s12 }
  0x1a   :  { %p97_p11 = scmp.ne.s32.totalorder %s27_s12, %s96_s30  ;;  %p102_p13 = scmp.lt.s32.totalorder %s96_s30, %s96_s30 }
  0x1c   :  { %p103_p0 = por %p102_p13, %p101_p12 }
  0x1e   :  { %p104_p1 = pnand %p103_p0, %p97_p11 }
  0x20   :  { %107 = shalt.err (!%p104_p1)
}
  0x21   :  { %29 = dma.hbm_to_vmem [thread:$0]  %s191_s1, 64, %s27_s12, [#allocation6]  }
  0x22   :  { %130 = dma.done.wait [#allocation3], 64  }
  0x23   :  { %131 = vsyncadd [#allocation3], 4294967232 }
  0x24   :  { %132 = dma.done.wait [#allocation6], 64  }
  0x25   :  { %133 = vsyncadd [#allocation6], 4294967232  ;;  %v40_v0 = vlaneseq  ;;  %s138_s4 = smov [#allocation7]   ;;  %v36_v1 = vld [vmem:[#allocation5] sm:$0xf] }
  0x26   :  { %s51_s5 = sshll.u32 %s138_s4, 4  ;;  %v38_v2 = vld [vmem:[#allocation2] sm:$0xf]  ;;  %vm37_vm1 = vcmp.gt.f32.partialorder %v36_v1, 1.4  ;;  %s52_s5 = int_to_ptr.vmem [resolvable:$true] %s51_s5 }
  0x27   :  { %vm42_vm0 = vcmp.lt.s32.totalorder %v40_v0, 512  ;;  %v39_v3 = vsel %vm37_vm1, %v38_v2, 0.0  ;;  %s108_s6 = scalar_lea.vmem %s52_s5, 64  ;;  %p113_p3 = scmp.lt.s32.totalorder %s52_s5, %s52_s5 }
  0x28   :  { %44 = vst.msk [vmem:[#allocation7] sm:$0xf] %vm42_vm0, %v39_v3  ;;  %p109_p2 = scmp.ne.s32.totalorder %s52_s5, %s108_s6  ;;  %p114_p4 = scmp.lt.s32.totalorder %s108_s6, %s108_s6 }
  0x2a   :  { %p115_p5 = por %p114_p4, %p113_p3 }
  0x2c   :  { %p116_p6 = pnand %p115_p5, %p109_p2 }
  0x2e   :  { %119 = shalt.err (!%p116_p6)
}
  0x2f   :  { %s120_s8 = scalar_lea.hbm %s192_s2, 64 }
  0x30   :  { %p121_p7 = scmp.ne.s32.totalorder %s192_s2, %s120_s8  ;;  %p124_p8 = scmp.lt.u32.totalorder %s120_s8, %s192_s2 }
  0x32   :  { %p126_p9 = pnand %p124_p8, %p121_p7 }
  0x34   :  { %129 = shalt.err (!%p126_p9)
}
  0x35   :  { %54 = dma.vmem_to_hbm [thread:$0]  %s52_s5, 64, %s192_s2, [#allocation4]  }
  0x36   :  { %134 = dma.done.wait [#allocation4], 64  }
  0x37   :  { %135 = vsyncadd [#allocation4], 4294967232 }
  0x38   :  { %58 = vsyncpa [#allocation3], 1 }
  0x39   :  { %59 = vsyncpa [#allocation6], 1 }
  0x3a   :  { %60 = vsyncpa [#allocation4], 1 }

</bundles_post_ra>
